<compile_context>
chip_gen: v7x
topology: tpu7x:2x2x1
jax: 0.10.0
libtpu: 0.0.40
codegen_flags: <defaults>
</compile_context>

<pallas_src>
import functools
import random

import jax
import jax.numpy as jnp
from jax.experimental import pallas as pl
from jax.experimental.pallas import tpu as pltpu


# Rows (columns of the transposed layout) per grid step.  Sweepable in the
# 8192-32768 range; 8192 keeps each (classes, TILE_N) f32 intermediate at
# ~160 KiB (moderate spill pressure) while amortizing per-step overhead.
_DEFAULT_TILE_N = 8192


def _label_smoothing_bce_kernel(smooth_ref, pred_ref, tgt_ref, out_ref, *,
                                n_total):
    """One lane-dense (classes, TILE_N) block -> one unscaled partial BCE sum."""
    i = pl.program_id(0)
    s = smooth_ref[0]                              # effective smoothing (coin flip folded)

    classes, tile_n = pred_ref.shape
    pred = pred_ref[...].astype(jnp.float32)       # (C, T); cast in-kernel only
    tgt = tgt_ref[...]                             # (1, T) int32 labels

    # Column-validity mask for the ragged tail (grid = cdiv(N, TILE_N)).
    col = jax.lax.broadcasted_iota(jnp.int32, (1, tile_n), 1) + i * tile_n
    valid = col < n_total                          # (1, T)
    pred = jnp.where(valid, pred, 0.0)             # keep padded columns finite

    # Softmax over the class (sublane) axis.  Classes live on sublanes now, so
    # these reductions are cheap sublane ops (XLU slot), not 128-lane reduces
    # over a 4%-utilized vreg as in the old (TILE_N, classes) layout.
    m = jnp.max(pred, axis=0, keepdims=True)       # (1, T)
    e = jnp.exp(pred - m)                          # (C, T)   EUP
    den = jnp.sum(e, axis=0, keepdims=True)        # (1, T)
    x = e * pl.reciprocal(den, approx=False)       # (C, T) softmax probabilities

    # softmax probability of the labelled class, per column.
    cls = jax.lax.broadcasted_iota(jnp.int32, (classes, tile_n), 0)
    x_tgt = jnp.sum(jnp.where(cls == tgt, x, 0.0), axis=0, keepdims=True)  # (1, T)

    # BCE-with-logits against the smoothed one-hot t = |onehot - s|, with the
    # linear term collapsed using sum_c x_c == 1 (valid for any s >= 0):
    #   sum_c x_c * (1 - t_c) = (1 - s) + (s - |1 - s|) * x[target]
    lin = (1.0 - s) + (s - jnp.abs(1.0 - s)) * x_tgt        # (1, T)
    lg = jnp.log1p(jnp.exp(-x))                             # (C, T)   EUP
    col_sum = lin + jnp.sum(lg, axis=0, keepdims=True)      # (1, T)

    # Unscaled partial sum for this block; mean scaling happens in the wrapper
    # (better precision than accumulating a pre-scaled running mean).
    block_sum = jnp.sum(jnp.where(valid, col_sum, 0.0))
    out_ref[...] = jnp.reshape(block_sum, (1, 1, 1))


def my_label_smoothing_loss(pred, target, *, classes=5, smoothing=0.0, p=0.5,
                            rng=random, tile_n=_DEFAULT_TILE_N):
    """Pallas port of MyLabelSmoothingLoss.forward."""
    n = pred.shape[0]
    assert pred.shape == (n, classes), "pred must be (N, classes)"

    # Host-side Bernoulli flip (same semantics as the PyTorch module's eager
    # `random.random() > self.p`), folded into one effective smoothing value
    # that is passed as a *runtime* SMEM operand, so the compiled kernel itself
    # never bakes the smoothing constant in.
    # TODO(synk): if this wrapper is traced under jax.jit, the Python flip runs
    # at trace time and freezes; a fully-traced per-step re-flip would need the
    # Bernoulli outcome (or a PRNG key) passed in as a traced argument.
    smooth_eff = float(smoothing) if rng.random() > p else 0.0
    smooth_arr = jnp.array([smooth_eff], dtype=jnp.float32)

    # Lane-dense layout plumbing: classes on sublanes, N on lanes.
    pred_t = jnp.transpose(pred)                         # (C, N), dtype preserved
    tgt_row = target.reshape(1, n).astype(jnp.int32)     # (1, N)

    if n <= tile_n:
        tile = n                                         # single full block
        num_blocks = 1
        n_pad = n
    else:
        tile = max(128, (int(tile_n) // 128) * 128)      # lane-aligned tile
        num_blocks = pl.cdiv(n, tile)
        n_pad = num_blocks * tile
    if n_pad != n:                                       # deterministic tail padding
        pred_t = jnp.pad(pred_t, ((0, 0), (0, n_pad - n)))
        tgt_row = jnp.pad(tgt_row, ((0, 0), (0, n_pad - n)))

    kernel = functools.partial(_label_smoothing_bce_kernel, n_total=n)

    partials = pl.pallas_call(
        kernel,
        out_shape=jax.ShapeDtypeStruct((num_blocks, 1, 1), jnp.float32),
        grid=(num_blocks,),
        in_specs=[
            pl.BlockSpec(memory_space=pltpu.MemorySpace.SMEM),   # effective smoothing
            pl.BlockSpec((classes, tile), lambda i: (0, i)),     # pred tile (lane-dense)
            pl.BlockSpec((1, tile), lambda i: (0, i)),           # target row tile
        ],
        out_specs=pl.BlockSpec((1, 1, 1), lambda i: (i, 0, 0)),  # per-block partial sum
        compiler_params=pltpu.CompilerParams(
            dimension_semantics=("parallel",)),   # independent blocks -> megacore on v7x
    )(smooth_arr, pred_t, tgt_row)

    return jnp.sum(partials) * (1.0 / float(n * classes))


def _reference(pred, target, classes, smoothing, apply_smooth):
    """Faithful JAX transcription of the PyTorch forward."""
    x = jax.nn.softmax(pred.astype(jnp.float32), axis=1)
    t = jax.nn.one_hot(target, classes, dtype=jnp.float32)
    if apply_smooth:
        t = jnp.abs(t - smoothing)
    per_elem = jnp.maximum(x, 0.0) - x * t + jnp.log1p(jnp.exp(-jnp.abs(x)))
    return jnp.mean(per_elem)


if __name__ == "__main__":
    classes = 5
    smoothing = 0.1
    p = 0.5

    # Small demo shape consistent with the module: (N, classes) logits.
    N = 8
    key = jax.random.PRNGKey(0)
    k_pred, k_tgt = jax.random.split(key)
    pred = jax.random.normal(k_pred, (N, classes), dtype=jnp.float32)
    target = jax.random.randint(k_tgt, (N,), 0, classes, dtype=jnp.int32)

    # random.Random(0).random() = 0.844 > 0.5 -> smoothing branch taken.
    loss = my_label_smoothing_loss(pred, target, classes=classes,
                                   smoothing=smoothing, p=p,
                                   rng=random.Random(0))
    loss = jax.block_until_ready(loss)
    applied = random.Random(0).random() > p
    ref = _reference(pred, target, classes, smoothing, applied)
    assert jnp.allclose(loss, ref, rtol=1e-5, atol=1e-5), (loss, ref)

    # Also exercise the multi-block parallel grid + ragged-tail path
    # (random.Random(1).random() = 0.134 <= 0.5 -> no-smoothing branch).
    N2 = 1000
    k2p, k2t = jax.random.split(jax.random.PRNGKey(1))
    pred2 = jax.random.normal(k2p, (N2, classes), dtype=jnp.float32)
    target2 = jax.random.randint(k2t, (N2,), 0, classes, dtype=jnp.int32)
    loss2 = my_label_smoothing_loss(pred2, target2, classes=classes,
                                    smoothing=smoothing, p=p,
                                    rng=random.Random(1), tile_n=128)
    loss2 = jax.block_until_ready(loss2)
    applied2 = random.Random(1).random() > p
    ref2 = _reference(pred2, target2, classes, smoothing, applied2)
    assert jnp.allclose(loss2, ref2, rtol=1e-5, atol=1e-5), (loss2, ref2)

    print("KERNEL_OK")
</pallas_src>

<mosaic_0001>
module attributes {stable_mosaic.version = 11 : i64} {
  func.func @_label_smoothing_bce_kernel(%arg0: i32, %arg1: memref<1xf32, #tpu.memory_space<smem>>, %arg2: memref<5x8xf32, #tpu.memory_space<vmem>>, %arg3: memref<1x8xi32, #tpu.memory_space<vmem>>, %arg4: memref<1x1x1xf32, #tpu.memory_space<vmem>>) attributes {dimension_semantics = [#tpu.dimension_semantics<parallel>], iteration_bounds = array<i64: 1>, scalar_prefetch = 0 : i64, scratch_operands = 0 : i64, tpu.core_type = #tpu.core_type<tc>, window_params = [{transform_indices = @transform_0, window_bounds = array<i64: 1>}, {transform_indices = @transform_1, window_bounds = array<i64: 5, 8>}, {transform_indices = @transform_2, window_bounds = array<i64: 1, 8>}, {transform_indices = @transform_3, window_bounds = array<i64: 1, 1, 1>}]} {
    %c0 = arith.constant 0 : index
    %0 = memref.load %arg1[%c0] : memref<1xf32, #tpu.memory_space<smem>>
    %c0_0 = arith.constant 0 : index
    %c0_1 = arith.constant 0 : index
    %1 = vector.load %arg2[%c0_0, %c0_1] : memref<5x8xf32, #tpu.memory_space<vmem>>, vector<5x8xf32>
    %c0_2 = arith.constant 0 : index
    %c0_3 = arith.constant 0 : index
    %2 = vector.load %arg3[%c0_2, %c0_3] : memref<1x8xi32, #tpu.memory_space<vmem>>, vector<1x8xi32>
    %3 = tpu.iota {dimensions = array<i32: 1>} : vector<1x8xi32>
    %c8_i32 = arith.constant 8 : i32
    %4 = arith.muli %arg0, %c8_i32 : i32
    %5 = vector.broadcast %4 : i32 to vector<1x8xi32>
    %6 = arith.addi %3, %5 : vector<1x8xi32>
    %c8_i32_4 = arith.constant 8 : i32
    %7 = vector.broadcast %c8_i32_4 : i32 to vector<1x8xi32>
    %8 = arith.cmpi slt, %6, %7 : vector<1x8xi32>
    %cst = arith.constant 0.000000e+00 : f32
    %9 = vector.shape_cast %8 : vector<1x8xi1> to vector<1x8xi1>
    %10 = vector.broadcast %9 : vector<1x8xi1> to vector<5x8xi1>
    %11 = vector.broadcast %cst : f32 to vector<5x8xf32>
    %12 = arith.select %10, %1, %11 : vector<5x8xi1>, vector<5x8xf32>
    %cst_5 = arith.constant dense<0xFF800000> : vector<8xf32>
    %13 = vector.multi_reduction <maximumf>, %12, %cst_5 [0] : vector<5x8xf32> to vector<8xf32>
    %14 = vector.shape_cast %13 : vector<8xf32> to vector<1x8xf32>
    %15 = vector.broadcast %14 : vector<1x8xf32> to vector<5x8xf32>
    %16 = arith.subf %12, %15 : vector<5x8xf32>
    %17 = math.exp %16 : vector<5x8xf32>
    %cst_6 = arith.constant dense<0.000000e+00> : vector<8xf32>
    %18 = vector.multi_reduction <add>, %17, %cst_6 [0] : vector<5x8xf32> to vector<8xf32>
    %19 = vector.shape_cast %18 : vector<8xf32> to vector<1x8xf32>
    %20 = tpu.reciprocal %19 : vector<1x8xf32> -> vector<1x8xf32>
    %21 = vector.broadcast %20 : vector<1x8xf32> to vector<5x8xf32>
    %22 = arith.mulf %17, %21 : vector<5x8xf32>
    %23 = tpu.iota {dimensions = array<i32: 0>} : vector<5x8xi32>
    %24 = vector.broadcast %2 : vector<1x8xi32> to vector<5x8xi32>
    %25 = arith.cmpi eq, %23, %24 : vector<5x8xi32>
    %cst_7 = arith.constant 0.000000e+00 : f32
    %26 = vector.broadcast %cst_7 : f32 to vector<5x8xf32>
    %27 = arith.select %25, %22, %26 : vector<5x8xi1>, vector<5x8xf32>
    %cst_8 = arith.constant dense<0.000000e+00> : vector<8xf32>
    %28 = vector.multi_reduction <add>, %27, %cst_8 [0] : vector<5x8xf32> to vector<8xf32>
    %29 = vector.shape_cast %28 : vector<8xf32> to vector<1x8xf32>
    %cst_9 = arith.constant 1.000000e+00 : f32
    %30 = arith.subf %cst_9, %0 : f32
    %cst_10 = arith.constant 1.000000e+00 : f32
    %31 = arith.subf %cst_10, %0 : f32
    %32 = math.absf %31 : f32
    %33 = arith.subf %0, %32 : f32
    %34 = vector.broadcast %33 : f32 to vector<1x8xf32>
    %35 = arith.mulf %34, %29 : vector<1x8xf32>
    %36 = vector.broadcast %30 : f32 to vector<1x8xf32>
    %37 = arith.addf %36, %35 : vector<1x8xf32>
    %cst_11 = arith.constant 0.000000e+00 : f32
    %38 = vector.broadcast %cst_11 : f32 to vector<5x8xf32>
    %39 = arith.subf %38, %22 : vector<5x8xf32>
    %40 = math.exp %39 : vector<5x8xf32>
    %41 = math.log1p %40 : vector<5x8xf32>
    %cst_12 = arith.constant dense<0.000000e+00> : vector<8xf32>
    %42 = vector.multi_reduction <add>, %41, %cst_12 [0] : vector<5x8xf32> to vector<8xf32>
    %43 = vector.shape_cast %42 : vector<8xf32> to vector<1x8xf32>
    %44 = arith.addf %37, %43 : vector<1x8xf32>
    %cst_13 = arith.constant 0.000000e+00 : f32
    %45 = vector.broadcast %cst_13 : f32 to vector<1x8xf32>
    %46 = arith.select %8, %44, %45 : vector<1x8xi1>, vector<1x8xf32>
    %47 = vector.shape_cast %46 : vector<1x8xf32> to vector<1x1x8xf32>
    %cst_14 = arith.constant dense<0.000000e+00> : vector<1xf32>
    %48 = vector.multi_reduction <add>, %47, %cst_14 [1, 2] : vector<1x1x8xf32> to vector<1xf32>
    %49 = vector.shape_cast %48 : vector<1xf32> to vector<1x1x1xf32>
    %50 = vector.extract %49[0, 0, 0] : f32 from vector<1x1x1xf32>
    %51 = vector.broadcast %50 : f32 to vector<1x1x1xf32>
    %c0_15 = arith.constant 0 : index
    %c0_16 = arith.constant 0 : index
    %c0_17 = arith.constant 0 : index
    %52 = vector.load %arg4[%c0_15, %c0_16, %c0_17] : memref<1x1x1xf32, #tpu.memory_space<vmem>>, vector<1x1x1xf32>
    tpu.vector_store %arg4[%c0_15, %c0_16, %c0_17], %51 {strides = array<i32>} : memref<1x1x1xf32, #tpu.memory_space<vmem>>, vector<1x1x1xf32>,
    return
  }
  func.func @transform_0(%arg0: i32) -> i32 {
    %c0_i32 = arith.constant 0 : i32
    %c0_i32_0 = arith.constant 0 : i32
    return %c0_i32 : i32
  }
  func.func @transform_1(%arg0: i32) -> (i32, i32) {
    %c0_i32 = arith.constant 0 : i32
    %c0_i32_0 = arith.constant 0 : i32
    return %c0_i32, %arg0 : i32, i32
  }
  func.func @transform_2(%arg0: i32) -> (i32, i32) {
    %c0_i32 = arith.constant 0 : i32
    %c0_i32_0 = arith.constant 0 : i32
    return %c0_i32, %arg0 : i32, i32
  }
  func.func @transform_3(%arg0: i32) -> (i32, i32, i32) {
    %c0_i32 = arith.constant 0 : i32
    %c0_i32_0 = arith.constant 0 : i32
    %c0_i32_1 = arith.constant 0 : i32
    return %arg0, %c0_i32, %c0_i32_0 : i32, i32, i32
  }
}

</mosaic_0001>

<bundles_post_ra>
// kernel: tpu_custom_call.1
= control target key start
LH: loop header
LB: loop body
LE: loop exit
PB: predicated region body
PF: predicated region fallthrough
CT: control target
= control target key end

     0   :  { %9 = vsyncpa [#allocation4], 0  ;;  %s259_s0 = inlined_call_operand.<no memory space> [shape: f32[1], index: 0, kind: input, shape index: {}]   ;;  %s260_s1 = inlined_call_operand.hbm [shape: f32[5,8], index: 1, kind: input, shape index: {}]   ;;  %s261_s2 = inlined_call_operand.vmem [shape: s32[1,8], index: 2, kind: input, shape index: {}]   ;;  %s262_s3 = inlined_call_operand.hbm [shape: f32[1,1,1], index: 3, kind: output, shape index: {}]  }
   0x1   :  { %10 = vsyncpa [#allocation5], 0  ;;  %s193_s12 = smov [#allocation3]   ;;  %s145_s16 = scalar_lea.hbm %s260_s1, 128 }
   0x2   :  { %s19_s13 = sshll.u32 %s193_s12, 4  ;;  %p146_p0 = scmp.ne.s32.totalorder %s260_s1, %s145_s16  ;;  %s20_s13 = int_to_ptr.vmem [resolvable:$true] %s19_s13 }
   0x3   :  { %p149_p1 = scmp.lt.u32.totalorder %s145_s16, %s260_s1 }
   0x5   :  { %p151_p2 = pnand %p149_p1, %p146_p0 }
   0x7   :  { %154 = shalt.err (!%p151_p2)
}
   0x8   :  { %s155_s21 = scalar_lea.vmem %s20_s13, 128  ;;  %p160_p4 = scmp.lt.s32.totalorder %s20_s13, %s20_s13 }
   0x9   :  { %p156_p3 = scmp.ne.s32.totalorder %s20_s13, %s155_s21  ;;  %p161_p5 = scmp.lt.s32.totalorder %s155_s21, %s155_s21 }
   0xb   :  { %p162_p6 = por %p161_p5, %p160_p4 }
   0xd   :  { %p163_p7 = pnand %p162_p6, %p156_p3 }
   0xf   :  { %166 = shalt.err (!%p163_p7)
}
  0x10   :  { %22 = dma.hbm_to_vmem [thread:$0]  %s260_s1, 128, %s20_s13, [#allocation4]  }
  0x11   :  { %189 = dma.done.wait [#allocation4], 128  }
  0x12   :  { %190 = vsyncadd [#allocation4], 4294967168  ;;  %v31_v0 = vlaneseq  ;;  %vm40_vm1 = vcmask 61440   ;;  %v29_v2 = vld [vmem:[#allocation3] sm:$0x1f]  ;;  %s75_s27 = ssub.f32 1.0, %s259_s0 }
  0x13   :  { %v132_v24 = vld [vmem:[%s261_s2] ss:$0 sm:$0xff]  ;;  %vm103_vm4 = vcmask 57344   ;;  %vm115_vm5 = vcmask 0  }
  0x14   :  { %v227_v1 = vand.u32 127, %v31_v0  ;;  %v61_v23 = vshrl.u32 %v31_v0, 7  ;;  %s76_s2 = sand.u32 2147483647, %s75_s27  ;;  %v80_v50 = vstv %s75_s27 }
  0x15   :  { %s77_s30 = ssub.f32 %s259_s0, %s76_s2  ;;  %s194_s0 = smov [#allocation6]  }
  0x16   :  { %vm36_vm0 = vcmp.lt.s32.totalorder %v227_v1, 8  ;;  %vm66_vm2 = vcmp.eq.s32.totalorder %v61_v23, %v132_v24  ;;  %s123_s4 = sshll.u32 %s194_s0, 4  ;;  %s124_s4 = int_to_ptr.vmem [resolvable:$true] %s123_s4 }
  0x17   :  { %v39_v3 = vsel %vm36_vm0, %v29_v2, 0.0  ;;  %v78_v46 = vstv %s77_s30  ;;  %s167_s6 = scalar_lea.vmem %s124_s4, 16  ;;  %s171_s7 = scalar_lea.vmem %s124_s4, 32 }
  0x18   :  { %v41_v4 = vsel %vm40_vm1, %v39_v3, -inf  ;;  %p168_p8 = scmp.ne.s32.totalorder %s124_s4, %s167_s6  ;;  %p172_p9 = scmp.lt.s32.totalorder %s124_s4, %s124_s4 }
  0x19   :  { %v42_v5 = vrot.slane %v41_v4, 4  ;;  %p173_p10 = scmp.lt.s32.totalorder %s171_s7, %s167_s6 }
  0x1b   :  { %v43_v6 = vmax.f32 %v41_v4, %v42_v5  ;;  %p174_p11 = por %p173_p10, %p172_p9 }
  0x1d   :  { %v44_v7 = vrot.slane %v43_v6, 2  ;;  %p175_p12 = pnand %p174_p11, %p168_p8 }
  0x1f   :  { %v45_v8 = vmax.f32 %v43_v6, %v44_v7 }
  0x21   :  { %v46_v9 = vrot.slane %v45_v8, 1 }
  0x23   :  { %v47_v10 = vmax.f32 %v45_v8, %v46_v9 }
  0x25   :  { %v48_v11 = vsub.f32 %v39_v3, %v47_v10 }
  0x27   :  { %v49_v12 = vmul.f32 1.442695, %v48_v11 }
  0x29   :  { %137 = vpow2.f32 %v49_v12 }
  0x33   :  { %v138_v13 = vpop.eup %137 }
  0x34   :  { %v51_v14 = vsel %vm40_vm1, %v138_v13, 0.0 }
  0x35   :  { %v52_v15 = vrot.slane %v51_v14, 4 }
  0x37   :  { %v53_v16 = vadd.f32 %v52_v15, %v51_v14 }
  0x39   :  { %v54_v17 = vrot.slane %v53_v16, 2 }
  0x3b   :  { %v55_v18 = vadd.f32 %v54_v17, %v53_v16 }
  0x3d   :  { %v56_v19 = vrot.slane %v55_v18, 1 }
  0x3f   :  { %v57_v20 = vadd.f32 %v56_v19, %v55_v18 }
  0x41   :  { %139 = vrcp.f32 %v57_v20 }
  0x4b   :  { %v140_v21 = vpop.eup %139 }
  0x4c   :  { %v59_v22 = vmul.f32 %v140_v21, %v138_v13 }
  0x4e   :  { %v82_v25 = vsub.f32 0.0, %v59_v22  ;;  %v67_v27 = vsel %vm66_vm2, %v59_v22, 0.0 }
  0x4f   :  { %v68_v28 = vsel %vm40_vm1, %v67_v27, 0.0 }
  0x50   :  { %v83_v26 = vmul.f32 1.442695, %v82_v25  ;;  %v69_v29 = vrot.slane %v68_v28, 4 }
  0x52   :  { %141 = vpow2.f32 %v83_v26  ;;  %v70_v32 = vadd.f32 %v69_v29, %v68_v28 }
  0x54   :  { %v71_v34 = vrot.slane %v70_v32, 2 }
  0x56   :  { %v72_v37 = vadd.f32 %v71_v34, %v70_v32 }
  0x58   :  { %v73_v40 = vrot.slane %v72_v37, 1 }
  0x5a   :  { %v74_v44 = vadd.f32 %v73_v40, %v72_v37 }
  0x5c   :  { %v142_v30 = vpop.eup %141  ;;  %v79_v48 = vmul.f32 %v78_v46, %v74_v44 }
  0x5d   :  { %v85_v31 = vadd.f32 1.0, %v142_v30  ;;  %v88_v33 = vmul.f32 -0.5, %v142_v30  ;;  %v91_v36 = vand.u32 2147483647, %v142_v30 }
  0x5e   :  { %v81_v52 = vadd.f32 %v80_v50, %v79_v48 }
  0x5f   :  { %143 = vlog2.f32 %v85_v31  ;;  %v89_v35 = vadd.f32 1.0, %v88_v33  ;;  %vm92_vm3 = vcmp.lt.f32.partialorder %v91_v36, 0.0004427343 }
  0x61   :  { %v90_v38 = vmul.f32 %v142_v30, %v89_v35 }
  0x69   :  { %v144_v39 = vpop.eup %143 }
  0x6a   :  { %v87_v41 = vmul.f32 0.6931472, %v144_v39 }
  0x6c   :  { %v93_v42 = vsel %vm92_vm3, %v90_v38, %v87_v41 }
  0x6d   :  { %v94_v43 = vsel %vm40_vm1, %v93_v42, 0.0 }
  0x6e   :  { %v95_v45 = vrot.slane %v94_v43, 4 }
  0x70   :  { %v96_v47 = vadd.f32 %v95_v45, %v94_v43 }
  0x72   :  { %v97_v49 = vrot.slane %v96_v47, 2 }
  0x74   :  { %v98_v51 = vadd.f32 %v97_v49, %v96_v47 }
  0x76   :  { %v99_v53 = vrot.slane %v98_v51, 1 }
  0x78   :  { %v100_v54 = vadd.f32 %v99_v53, %v98_v51 }
  0x7a   :  { %v101_v55 = vadd.f32 %v100_v54, %v81_v52 }
  0x7c   :  { %v102_v56 = vsel %vm36_vm0, %v101_v55, 0.0 }
  0x7d   :  { %v104_v57 = vsel %vm103_vm4, %v102_v56, 0.0 }
  0x7e   :  { %105 = vadd.xlane.f32.xlu0 %v104_v57 }
 0x10b   :  { %v106_v58 = vpop.xlane.xlu0 %105 }
 0x10c   :  { %v107_v59 = vrot.slane %v106_v58, 4 }
 0x10e   :  { %v108_v60 = vadd.f32 %v107_v59, %v106_v58 }
 0x110   :  { %v109_v61 = vrot.slane %v108_v60, 2 }
 0x112   :  { %v110_v62 = vadd.f32 %v109_v61, %v108_v60 }
 0x114   :  { %v111_v63 = vrot.slane %v110_v62, 1 }
 0x116   :  { %v112_v0 = vadd.f32 %v111_v63, %v110_v62 }
 0x118   :  { %133 = vpush %v112_v0 }
 0x149   :  { %s134_s5 = spop %133 }
 0x14a   :  { %v114_v2 = vstv %s134_s5 }
 0x14b   :  { %116 = vst.msk [vmem:[#allocation6] sm:$0x1] %vm115_vm5, %v114_v2 }
 0x14c   :  { %178 = shalt.err (!%p175_p12)
}
 0x14d   :  { %s179_s10 = scalar_lea.hbm %s262_s3, 16 }
 0x14e   :  { %p180_p13 = scmp.ne.s32.totalorder %s262_s3, %s179_s10  ;;  %p183_p0 = scmp.lt.u32.totalorder %s179_s10, %s262_s3 }
 0x150   :  { %p185_p1 = pnand %p183_p0, %p180_p13 }
 0x152   :  { %188 = shalt.err (!%p185_p1)
}
 0x153   :  { %126 = dma.vmem_to_hbm [thread:$0]  %s124_s4, 16, %s262_s3, [#allocation5]  }
 0x154   :  { %191 = dma.done.wait [#allocation5], 16  }
 0x155   :  { %192 = vsyncadd [#allocation5], 4294967280 }
 0x156   :  { %130 = vsyncpa [#allocation4], 1 }
 0x157   :  { %131 = vsyncpa [#allocation5], 1 }

</bundles_post_ra>
